<compile_context>
chip_gen: v5e
topology: v5e:2x2
jax: 0.10.0
libtpu: 0.0.40
codegen_flags: <defaults>
</compile_context>

<pallas_src>
import jax
import jax.numpy as jnp
from jax.experimental import pallas as pl
from jax.experimental.pallas import tpu as pltpu


# --------------------------------------------------------------------------
# Kernel 1: raw logits + online log-sum-exp stats.
# --------------------------------------------------------------------------
def _logits_lse_kernel(x_ref, w_ref, b_ref, logits_ref, lse_ref, m_sc, l_sc):
    # x_ref: (tm, d_model) bf16      w_ref: (d_model, tn) bf16
    # b_ref: (1, tn) f32             logits_ref: (tm, tn) f32 (raw logits out)
    # lse_ref: (tm, 1) f32 (written on last vocab tile)
    # m_sc / l_sc: (tm, 1) f32 running max / sum-of-exp (scratch, carried over
    # the vocab grid axis).
    j = pl.program_id(1)
    nj = pl.num_programs(1)

    logits = jnp.dot(x_ref[...], w_ref[...],
                     preferred_element_type=jnp.float32) + b_ref[...]
    # Write the unnormalized logits once (lane-dense f32 panel).
    logits_ref[...] = logits

    @pl.when(j == 0)
    def _init():
        m_sc[...] = jnp.full_like(m_sc, -jnp.inf)
        l_sc[...] = jnp.zeros_like(l_sc)

    m_prev = m_sc[...]
    m_new = jnp.maximum(m_prev, jnp.max(logits, axis=-1, keepdims=True))
    # Guard -inf - -inf = NaN (e.g. a fully masked first panel).
    alpha = jnp.where(m_new == -jnp.inf, 0.0, jnp.exp(m_prev - m_new))
    l_sc[...] = alpha * l_sc[...] + jnp.sum(jnp.exp(logits - m_new),
                                            axis=-1, keepdims=True)
    m_sc[...] = m_new

    @pl.when(j == nj - 1)
    def _finalize():
        lse_ref[...] = m_sc[...] + jnp.log(l_sc[...])


# --------------------------------------------------------------------------
# Kernel 2: matmul-free normalization fixup (out = logits - lse).
# --------------------------------------------------------------------------
def _normalize_kernel(logits_ref, lse_ref, o_ref):
    o_ref[...] = (logits_ref[...] - lse_ref[...]).astype(o_ref.dtype)


# --------------------------------------------------------------------------
# Helpers.
# --------------------------------------------------------------------------
def _round_up(a, m):
    return (a + m - 1) // m * m


def _vmem_limit_bytes(tile_bytes):
    # Double-buffered pipeline buffers + small margin, clamped to what the
    # chip physically has (v7x: 64 MiB / TC) with headroom for the compiler.
    total = 2 * tile_bytes + (2 << 20)
    try:
        cap = int(pltpu.get_tpu_info().vmem_capacity_bytes * 7 // 8)
    except Exception:
        cap = 100 << 20
    return int(min(max(total, 16 << 20), cap))


# --------------------------------------------------------------------------
# Forward wrapper.
# --------------------------------------------------------------------------
def generator_forward(x, w, b, *, tm=512, tn=2048,
                      compute_dtype=jnp.bfloat16, out_dtype=jnp.float32):
    """x: [N, d_model], w: [d_model, vocab], b: [vocab] -> [N, vocab] log-probs.

    Pass x / w already in bf16 at the call site to make the casts below no-ops.
    """
    N, d_model = x.shape
    vocab = w.shape[1]

    # Tile selection + padding to (8, 128)-friendly multiples.
    tm = min(tm, _round_up(N, 8))
    tn = min(tn, _round_up(vocab, 128))
    n_pad = _round_up(N, tm)
    v_pad = _round_up(vocab, tn)
    n_row = n_pad // tm
    n_vocab = v_pad // tn

    xc = x.astype(compute_dtype)
    wc = w.astype(compute_dtype)
    bf = b.astype(jnp.float32)
    if n_pad != N:
        xc = jnp.pad(xc, ((0, n_pad - N), (0, 0)))
    if v_pad != vocab:
        wc = jnp.pad(wc, ((0, 0), (0, v_pad - vocab)))
        # Large-but-finite negative bias on padded vocab lanes: exp -> 0,
        # no -inf arithmetic anywhere.
        bf = jnp.pad(bf, (0, v_pad - vocab), constant_values=-1e30)
    b2d = bf.reshape(1, v_pad)

    itemsize = lambda dt: jnp.dtype(dt).itemsize
    main_tile_bytes = (tm * d_model * itemsize(compute_dtype)      # x tile
                       + d_model * tn * itemsize(compute_dtype)    # W panel
                       + tn * 4                                    # bias panel
                       + tm * tn * 4                               # logits out
                       + tm * 4)                                   # lse out
    cost = pl.CostEstimate(
        flops=2 * n_pad * d_model * v_pad,
        transcendentals=n_pad * v_pad + n_pad,                     # exp + log
        bytes_accessed=(xc.size * itemsize(compute_dtype)
                        + n_row * wc.size * itemsize(compute_dtype)  # W streamed per row tile
                        + b2d.size * 4
                        + n_pad * v_pad * 4 + n_pad * 4),
    )

    raw_logits, lse = pl.pallas_call(
        _logits_lse_kernel,
        out_shape=(jax.ShapeDtypeStruct((n_pad, v_pad), jnp.float32),
                   jax.ShapeDtypeStruct((n_pad, 1), jnp.float32)),
        grid_spec=pltpu.PrefetchScalarGridSpec(
            num_scalar_prefetch=0,
            grid=(n_row, n_vocab),
            in_specs=[
                pl.BlockSpec((tm, d_model), lambda i, j: (i, 0)),   # x row tile
                pl.BlockSpec((d_model, tn), lambda i, j: (0, j)),   # W panel
                pl.BlockSpec((1, tn), lambda i, j: (0, j)),         # bias panel
            ],
            out_specs=[
                pl.BlockSpec((tm, tn), lambda i, j: (i, j)),        # raw logits
                pl.BlockSpec((tm, 1), lambda i, j: (i, 0)),         # lse (written at last j)
            ],
            scratch_shapes=[pltpu.VMEM((tm, 1), jnp.float32),       # running max m
                            pltpu.VMEM((tm, 1), jnp.float32)],      # running sum l
        ),
        compiler_params=pltpu.CompilerParams(
            dimension_semantics=("parallel", "arbitrary"),
            vmem_limit_bytes=_vmem_limit_bytes(main_tile_bytes)),
        cost_estimate=cost,
    )(xc, wc, b2d)

    # TODO(synk): on v7x, vocab-parallel core sharding (per-core m/l merged in
    # the fixup) would halve per-core W HBM traffic vs. row-parallel sharding.

    fix_tile_bytes = tm * tn * 4 + tm * 4 + tm * tn * itemsize(out_dtype)
    alias = ({0: 0} if jnp.dtype(out_dtype) == jnp.dtype(jnp.float32) else {})
    out = pl.pallas_call(
        _normalize_kernel,
        out_shape=jax.ShapeDtypeStruct((n_pad, v_pad), out_dtype),
        grid_spec=pltpu.PrefetchScalarGridSpec(
            num_scalar_prefetch=0,
            grid=(n_row, n_vocab),
            in_specs=[
                pl.BlockSpec((tm, tn), lambda i, j: (i, j)),        # raw logits
                pl.BlockSpec((tm, 1), lambda i, j: (i, 0)),         # lse
            ],
            out_specs=pl.BlockSpec((tm, tn), lambda i, j: (i, j)),
        ),
        compiler_params=pltpu.CompilerParams(
            dimension_semantics=("parallel", "parallel"),
            vmem_limit_bytes=_vmem_limit_bytes(fix_tile_bytes)),
        input_output_aliases=alias,                                 # donate raw logits
    )(raw_logits, lse)

    if n_pad != N or v_pad != vocab:
        out = out[:N, :vocab]
    return out


if __name__ == "__main__":
    # Small shapes consistent with the module: batch=2, seq=8, d_model=32, vocab=128
    batch, seq, d_model, vocab = 2, 8, 32, 128

    key = jax.random.PRNGKey(0)
    kx, kw, kb = jax.random.split(key, 3)

    x = jax.random.normal(kx, (batch, seq, d_model), dtype=jnp.float32)
    # PyTorch Linear stores weight as [vocab, d_model]; we keep the transposed
    # [d_model, vocab] layout for the kernel's row-major matmul.
    w = jax.random.normal(kw, (d_model, vocab), dtype=jnp.float32) * (1.0 / jnp.sqrt(d_model))
    b = jax.random.normal(kb, (vocab,), dtype=jnp.float32) * 0.01

    x_flat = x.reshape(batch * seq, d_model)
    out = generator_forward(x_flat, w, b)
    out = out.reshape(batch, seq, vocab)
    jax.block_until_ready(out)

    # Reference (pure JAX) with the same bf16 input cast, f32 math.
    xr = x.astype(jnp.bfloat16).astype(jnp.float32)
    wr = w.astype(jnp.bfloat16).astype(jnp.float32)
    ref = jax.nn.log_softmax(xr @ wr + b, axis=-1)
    assert jnp.allclose(out, ref, atol=2e-3, rtol=2e-3), "mismatch vs reference"

    print("KERNEL_OK")
</pallas_src>

<mosaic_0001>
module attributes {stable_mosaic.version = 11 : i64} {
  func.func @_logits_lse_kernel(%arg0: i32, %arg1: i32, %arg2: memref<16x32xbf16, #tpu.memory_space<vmem>>, %arg3: memref<32x128xbf16, #tpu.memory_space<vmem>>, %arg4: memref<1x128xf32, #tpu.memory_space<vmem>>, %arg5: memref<16x128xf32, #tpu.memory_space<vmem>>, %arg6: memref<16x1xf32, #tpu.memory_space<vmem>>, %arg7: memref<16x1xf32, #tpu.memory_space<vmem>>, %arg8: memref<16x1xf32, #tpu.memory_space<vmem>>) attributes {dimension_semantics = [#tpu.dimension_semantics<parallel>, #tpu.dimension_semantics<arbitrary>], iteration_bounds = array<i64: 1, 1>, scalar_prefetch = 0 : i64, scratch_operands = 2 : i64, tpu.core_type = #tpu.core_type<tc>, window_params = [{transform_indices = @transform_0, window_bounds = array<i64: 16, 32>}, {transform_indices = @transform_1, window_bounds = array<i64: 32, 128>}, {transform_indices = @transform_2, window_bounds = array<i64: 1, 128>}, {transform_indices = @transform_3, window_bounds = array<i64: 16, 128>}, {transform_indices = @transform_4, window_bounds = array<i64: 16, 1>}]} {
    %c0 = arith.constant 0 : index
    %c0_0 = arith.constant 0 : index
    %0 = vector.load %arg2[%c0, %c0_0] : memref<16x32xbf16, #tpu.memory_space<vmem>>, vector<16x32xbf16>
    %c0_1 = arith.constant 0 : index
    %c0_2 = arith.constant 0 : index
    %1 = vector.load %arg3[%c0_1, %c0_2] : memref<32x128xbf16, #tpu.memory_space<vmem>>, vector<32x128xbf16>
    %cst = arith.constant dense<0.000000e+00> : vector<16x128xf32>
    %2 = tpu.matmul %0, %1, %cst {dimension_numbers = #tpu.dot_dimension_numbers<[1], [0], [0], [1], [0, 0, 1, 1], [], []>} : vector<16x32xbf16>, vector<32x128xbf16>, vector<16x128xf32> -> vector<16x128xf32>
    %c0_3 = arith.constant 0 : index
    %c0_4 = arith.constant 0 : index
    %3 = vector.load %arg4[%c0_3, %c0_4] : memref<1x128xf32, #tpu.memory_space<vmem>>, vector<1x128xf32>
    %4 = vector.broadcast %3 : vector<1x128xf32> to vector<16x128xf32>
    %5 = arith.addf %2, %4 : vector<16x128xf32>
    %c0_5 = arith.constant 0 : index
    %c0_6 = arith.constant 0 : index
    %6 = vector.load %arg5[%c0_5, %c0_6] : memref<16x128xf32, #tpu.memory_space<vmem>>, vector<16x128xf32>
    tpu.vector_store %arg5[%c0_5, %c0_6], %5 {strides = array<i32>} : memref<16x128xf32, #tpu.memory_space<vmem>>, vector<16x128xf32>,
    %c0_i32 = arith.constant 0 : i32
    %7 = arith.cmpi eq, %arg1, %c0_i32 : i32
    %8 = arith.extui %7 : i1 to i32
    %c0_i32_7 = arith.constant 0 : i32
    %9 = arith.cmpi ne, %8, %c0_i32_7 : i32
    scf.if %9 {
      %cst_22 = arith.constant 0xFF800000 : f32
      %33 = vector.broadcast %cst_22 : f32 to vector<16x1xf32>
      %c0_23 = arith.constant 0 : index
      %c0_24 = arith.constant 0 : index
      %34 = vector.load %arg7[%c0_23, %c0_24] : memref<16x1xf32, #tpu.memory_space<vmem>>, vector<16x1xf32>
      tpu.vector_store %arg7[%c0_23, %c0_24], %33 {strides = array<i32>} : memref<16x1xf32, #tpu.memory_space<vmem>>, vector<16x1xf32>,
      %cst_25 = arith.constant 0.000000e+00 : f32
      %35 = vector.broadcast %cst_25 : f32 to vector<16x1xf32>
      %c0_26 = arith.constant 0 : index
      %c0_27 = arith.constant 0 : index
      %36 = vector.load %arg8[%c0_26, %c0_27] : memref<16x1xf32, #tpu.memory_space<vmem>>, vector<16x1xf32>
      tpu.vector_store %arg8[%c0_26, %c0_27], %35 {strides = array<i32>} : memref<16x1xf32, #tpu.memory_space<vmem>>, vector<16x1xf32>,
    } else {
    }
    %c0_8 = arith.constant 0 : index
    %c0_9 = arith.constant 0 : index
    %10 = vector.load %arg7[%c0_8, %c0_9] : memref<16x1xf32, #tpu.memory_space<vmem>>, vector<16x1xf32>
    %cst_10 = arith.constant dense<0xFF800000> : vector<16xf32>
    %11 = vector.multi_reduction <maximumf>, %5, %cst_10 [1] : vector<16x128xf32> to vector<16xf32>
    %12 = vector.shape_cast %11 : vector<16xf32> to vector<16x1xf32>
    %13 = arith.maximumf %10, %12 : vector<16x1xf32>
    %cst_11 = arith.constant 0xFF800000 : f32
    %14 = vector.broadcast %cst_11 : f32 to vector<16x1xf32>
    %15 = arith.cmpf oeq, %13, %14 : vector<16x1xf32>
    %16 = arith.subf %10, %13 : vector<16x1xf32>
    %17 = math.exp %16 : vector<16x1xf32>
    %cst_12 = arith.constant 0.000000e+00 : f32
    %18 = vector.broadcast %cst_12 : f32 to vector<16x1xf32>
    %19 = arith.select %15, %18, %17 : vector<16x1xi1>, vector<16x1xf32>
    %c0_13 = arith.constant 0 : index
    %c0_14 = arith.constant 0 : index
    %20 = vector.load %arg8[%c0_13, %c0_14] : memref<16x1xf32, #tpu.memory_space<vmem>>, vector<16x1xf32>
    %21 = arith.mulf %19, %20 : vector<16x1xf32>
    %22 = vector.broadcast %13 : vector<16x1xf32> to vector<16x128xf32>
    %23 = arith.subf %5, %22 : vector<16x128xf32>
    %24 = math.exp %23 : vector<16x128xf32>
    %cst_15 = arith.constant dense<0.000000e+00> : vector<16xf32>
    %25 = vector.multi_reduction <add>, %24, %cst_15 [1] : vector<16x128xf32> to vector<16xf32>
    %26 = vector.shape_cast %25 : vector<16xf32> to vector<16x1xf32>
    %27 = arith.addf %21, %26 : vector<16x1xf32>
    %c0_16 = arith.constant 0 : index
    %c0_17 = arith.constant 0 : index
    %28 = vector.load %arg8[%c0_16, %c0_17] : memref<16x1xf32, #tpu.memory_space<vmem>>, vector<16x1xf32>
    tpu.vector_store %arg8[%c0_16, %c0_17], %27 {strides = array<i32>} : memref<16x1xf32, #tpu.memory_space<vmem>>, vector<16x1xf32>,
    %c0_18 = arith.constant 0 : index
    %c0_19 = arith.constant 0 : index
    %29 = vector.load %arg7[%c0_18, %c0_19] : memref<16x1xf32, #tpu.memory_space<vmem>>, vector<16x1xf32>
    tpu.vector_store %arg7[%c0_18, %c0_19], %13 {strides = array<i32>} : memref<16x1xf32, #tpu.memory_space<vmem>>, vector<16x1xf32>,
    %c0_i32_20 = arith.constant 0 : i32
    %30 = arith.cmpi eq, %arg1, %c0_i32_20 : i32
    %31 = arith.extui %30 : i1 to i32
    %c0_i32_21 = arith.constant 0 : i32
    %32 = arith.cmpi ne, %31, %c0_i32_21 : i32
    scf.if %32 {
      %c0_22 = arith.constant 0 : index
      %c0_23 = arith.constant 0 : index
      %33 = vector.load %arg7[%c0_22, %c0_23] : memref<16x1xf32, #tpu.memory_space<vmem>>, vector<16x1xf32>
      %c0_24 = arith.constant 0 : index
      %c0_25 = arith.constant 0 : index
      %34 = vector.load %arg8[%c0_24, %c0_25] : memref<16x1xf32, #tpu.memory_space<vmem>>, vector<16x1xf32>
      %35 = math.log %34 : vector<16x1xf32>
      %36 = arith.addf %33, %35 : vector<16x1xf32>
      %c0_26 = arith.constant 0 : index
      %c0_27 = arith.constant 0 : index
      %37 = vector.load %arg6[%c0_26, %c0_27] : memref<16x1xf32, #tpu.memory_space<vmem>>, vector<16x1xf32>
      tpu.vector_store %arg6[%c0_26, %c0_27], %36 {strides = array<i32>} : memref<16x1xf32, #tpu.memory_space<vmem>>, vector<16x1xf32>,
    } else {
    }
    return
  }
  func.func @transform_0(%arg0: i32, %arg1: i32) -> (i32, i32) {
    %c0_i32 = arith.constant 0 : i32
    %c0_i32_0 = arith.constant 0 : i32
    return %arg0, %c0_i32 : i32, i32
  }
  func.func @transform_1(%arg0: i32, %arg1: i32) -> (i32, i32) {
    %c0_i32 = arith.constant 0 : i32
    %c0_i32_0 = arith.constant 0 : i32
    return %c0_i32, %arg1 : i32, i32
  }
  func.func @transform_2(%arg0: i32, %arg1: i32) -> (i32, i32) {
    %c0_i32 = arith.constant 0 : i32
    %c0_i32_0 = arith.constant 0 : i32
    return %c0_i32, %arg1 : i32, i32
  }
  func.func @transform_3(%arg0: i32, %arg1: i32) -> (i32, i32) {
    %c0_i32 = arith.constant 0 : i32
    return %arg0, %arg1 : i32, i32
  }
  func.func @transform_4(%arg0: i32, %arg1: i32) -> (i32, i32) {
    %c0_i32 = arith.constant 0 : i32
    %c0_i32_0 = arith.constant 0 : i32
    return %arg0, %c0_i32 : i32, i32
  }
}

</mosaic_0001>

<bundles_post_ra>
// kernel: tpu_custom_call.1
= control target key start
LH: loop header
LB: loop body
LE: loop exit
PB: predicated region body
PF: predicated region fallthrough
CT: control target
= control target key end

     0   :  { %10 = vsyncpa [#allocation5], 0  ;;  %s376_s0 = inlined_call_operand.hbm [shape: bf16[16,32], index: 0, kind: input, shape index: {}]   ;;  %s377_s1 = inlined_call_operand.hbm [shape: bf16[32,128], index: 1, kind: input, shape index: {}]   ;;  %s378_s2 = inlined_call_operand.vmem [shape: f32[1,128], index: 2, kind: input, shape index: {}]   ;;  %s379_s3 = inlined_call_operand.hbm [shape: f32[16,128], index: 3, kind: output, shape index: {0}]   ;;  %s380_s4 = inlined_call_operand.vmem [shape: f32[16,1], index: 4, kind: output, shape index: {1}]  }
   0x1   :  { %11 = vsyncpa [#allocation8], 0 }
   0x2   :  { %12 = vsyncpa [#allocation6], 0  ;;  %s17_s17 = sshll.u32 %s376_s0, 4  ;;  %s313_s18 = smov [#allocation4]   ;;  %s18_s17 = int_to_ptr.hbm [resolvable:$true] %s17_s17 }
   0x3   :  { %s19_s19 = sshll.u32 %s313_s18, 4  ;;  %s30_s22 = sshll.u32 %s377_s1, 4  ;;  %s20_s19 = int_to_ptr.vmem [resolvable:$true] %s19_s19  ;;  %s31_s22 = int_to_ptr.hbm [resolvable:$true] %s30_s22 }
   0x4   :  { %s314_s23 = smov 64   ;;  %s315_s24 = smov 4  }
   0x5   :  { %25 = dma.hbm_to_vmem [thread:$0]  %s18_s17, 128, %s20_s19, [#allocation5], %s314_s23, %s314_s23, %s315_s24  }
   0x6   :  { %s316_s25 = smov [#allocation7]  }
   0x7   :  { %s32_s26 = sshll.u32 %s316_s25, 4  ;;  %s33_s26 = int_to_ptr.vmem [resolvable:$true] %s32_s26 }
   0x8   :  { %38 = dma.hbm_to_vmem [thread:$0]  %s31_s22, 256, %s33_s26, [#allocation8], %s314_s23, %s314_s23, %s315_s24  }
   0x9   :  { %307 = dma.done.wait [#allocation5], 128  }
   0xa   :  { %308 = vsyncadd [#allocation5], 4294967168 }
   0xb   :  { %309 = dma.done.wait [#allocation8], 256  }
   0xc   :  { %310 = vsyncadd [#allocation8], 4294967040  ;;  %v209_v0 = vld [vmem:[#allocation7 + $0x8] sm:$0xff]  ;;  %v208_v1 = vld [vmem:[#allocation7] sm:$0xff]  ;;  %vm77_vm0 = vcmask 261120   ;;  %vm101_vm1 = vcmask 7168  }
   0xd   :  { %87 = vmatpush.bf16.msra.mxu0 %v209_v0  ;;  %v207_v2 = vld [vmem:[#allocation4] sm:$0xff]  ;;  %v317_v3 = vmov -inf   ;;  %v318_v9 = vmov 0   ;;  %v319_v10 = vmov 0.0   ;;  %s176_s30 = sshll.u32 %s379_s3, 4  ;;  %s321_s5 = smov 128   ;;  %s177_s30 = int_to_ptr.hbm [resolvable:$true] %s176_s30 }
   0xe   :  { %102 = vst.msk [vmem:[#allocation2] sm:$0xff] %vm101_vm1, %v317_v3  ;;  %v222_v4 = vld [vmem:[%s378_s2] ss:$0 sm:$0xff]  ;;  %220 = vset.pattern.permute.xlu1 %v318_v9  ;;  %221 = vset.pattern.permute.xlu0 %v318_v9  ;;  %s320_s2 = smov [#allocation9]   ;;  %s322_s6 = smov 8  }
   0xf   :  { %103 = vst.msk [vmem:[#allocation2 + $0x8] sm:$0xff] %vm101_vm1, %v317_v3  ;;  %s174_s27 = sshll.u32 %s320_s2, 4  ;;  %s175_s27 = int_to_ptr.vmem [resolvable:$true] %s174_s27 }
  0x10   :  { %104 = vst.msk [vmem:[#allocation3] sm:$0xff] %vm101_vm1, %v319_v10 }
  0x11   :  { %88 = vmatpush.bf16.msra.mxu0 %v208_v1  ;;  %105 = vst.msk [vmem:[#allocation3 + $0x8] sm:$0xff] %vm101_vm1, %v319_v10 }
  0x14   :  { %206 = vmatmul.msk.bf16.vlgmr.msra.gmra.mxu0 %vm77_vm0, %v207_v2 }
  0x15   :  { %v106_v11 = vld [vmem:[#allocation2] sm:$0xff] }
  0x16   :  { %v107_v16 = vld [vmem:[#allocation2 + $0x8] sm:$0xff] }
  0x17   :  { %v124_v33 = vld [vmem:[#allocation3] sm:$0xff] }
  0x18   :  { %v125_v37 = vld [vmem:[#allocation3 + $0x8] sm:$0xff] }
  0x91   :  { %v90_v5 = vpop.f32.mrf.mxu0 }
  0x92   :  { %v91_v6 = vadd.f32 %v222_v4, %v90_v5 }
  0x94   :  { %95 = vst [vmem:[#allocation9] sm:$0xff] %v91_v6  ;;  %108 = vmax.xlane.f32.xlu0 %v91_v6 }
  0x99   :  { %v92_v7 = vpop.f32.mrf.mxu0 }
  0x9a   :  { %v93_v8 = vadd.f32 %v222_v4, %v92_v7 }
  0x9c   :  { %96 = vst [vmem:[#allocation9 + $0x8] sm:$0xff] %v93_v8  ;;  %110 = vmax.xlane.f32.xlu0 %v93_v8 }
  0x9d   :  { %182 = dma.vmem_to_hbm [thread:$0]  %s175_s27, 256, %s177_s30, [#allocation6], %s321_s5, %s321_s5, %s322_s6  }
 0x107   :  { %v109_v12 = vpop.xlane.xlu0 %108 }
 0x108   :  { %v112_v13 = vmax.f32 %v106_v11, %v109_v12 }
 0x10a   :  { %v116_v14 = vsub.f32 %v106_v11, %v112_v13  ;;  %153 = vst.msk [vmem:[#allocation2] sm:$0xff] %vm101_vm1, %v112_v13  ;;  %130 = vperm.xlu1 %220, %v112_v13   ;;  %vm114_vm2 = vcmp.eq.f32.partialorder %v112_v13, -inf }
 0x10c   :  { %v118_v15 = vmul.f32 1.442695, %v116_v14 }
 0x10e   :  { %223 = vpow2.f32 %v118_v15 }
 0x10f   :  { %v111_v17 = vpop.xlane.xlu0 %110 }
 0x110   :  { %v113_v18 = vmax.f32 %v107_v16, %v111_v17 }
 0x111   :  { %v158_v45 = vld [vmem:[#allocation2] sm:$0xff] }
 0x112   :  { %v117_v19 = vsub.f32 %v107_v16, %v113_v18  ;;  %154 = vst.msk [vmem:[#allocation2 + $0x8] sm:$0xff] %vm101_vm1, %v113_v18  ;;  %135 = vperm.xlu1 %220, %v113_v18   ;;  %vm115_vm3 = vcmp.eq.f32.partialorder %v113_v18, -inf }
 0x114   :  { %v224_v20 = vpop.eup %223  ;;  %v120_v21 = vmul.f32 1.442695, %v117_v19 }
 0x115   :  { %v122_v22 = vsel %vm114_vm2, 0.0, %v224_v20 }
 0x116   :  { %225 = vpow2.f32 %v120_v21  ;;  %v126_v34 = vmul.f32 %v124_v33, %v122_v22 }
 0x119   :  { %v159_v49 = vld [vmem:[#allocation2 + $0x8] sm:$0xff] }
 0x11c   :  { %v226_v23 = vpop.eup %225 }
 0x11d   :  { %v123_v24 = vsel %vm115_vm3, 0.0, %v226_v23 }
 0x11e   :  { %v127_v38 = vmul.f32 %v125_v37, %v123_v24 }
 0x17c   :  { %v131_v25 = vpop.permute.xlu1 %130 }
 0x17d   :  { %v138_v26 = vsub.f32 %v91_v6, %v131_v25 }
 0x17f   :  { %v140_v27 = vmul.f32 1.442695, %v138_v26 }
 0x181   :  { %227 = vpow2.f32 %v140_v27 }
 0x184   :  { %v136_v28 = vpop.permute.xlu1 %135 }
 0x185   :  { %v139_v29 = vsub.f32 %v93_v8, %v136_v28 }
 0x187   :  { %v228_v30 = vpop.eup %227  ;;  %v142_v31 = vmul.f32 1.442695, %v139_v29 }
 0x188   :  { %144 = vadd.xlane.f32.xlu2 %v228_v30 }
 0x189   :  { %229 = vpow2.f32 %v142_v31 }
 0x18f   :  { %v230_v32 = vpop.eup %229 }
 0x190   :  { %146 = vadd.xlane.f32.xlu2 %v230_v32 }
 0x1fb   :  { %v145_v35 = vpop.xlane.xlu2 %144 }
 0x1fc   :  { %v148_v36 = vadd.f32 %v145_v35, %v126_v34 }
 0x1fe   :  { %151 = vst.msk [vmem:[#allocation3] sm:$0xff] %vm101_vm1, %v148_v36 }
 0x203   :  { %v147_v39 = vpop.xlane.xlu2 %146 }
 0x204   :  { %v149_v40 = vadd.f32 %v147_v39, %v127_v38 }
 0x205   :  { %v160_v41 = vld [vmem:[#allocation3] sm:$0xff] }
 0x206   :  { %231 = vlog2.f32 %v160_v41  ;;  %152 = vst.msk [vmem:[#allocation3 + $0x8] sm:$0xff] %vm101_vm1, %v149_v40 }
 0x20c   :  { %v232_v42 = vpop.eup %231 }
 0x20d   :  { %v163_v43 = vmul.f32 0.6931472, %v232_v42  ;;  %v161_v44 = vld [vmem:[#allocation3 + $0x8] sm:$0xff] }
 0x20e   :  { %233 = vlog2.f32 %v161_v44 }
 0x20f   :  { %v166_v46 = vadd.f32 %v163_v43, %v158_v45 }
 0x211   :  { %168 = vst.msk [vmem:[%s380_s4] sm:$0xff] %vm101_vm1, %v166_v46 }
 0x214   :  { %v234_v47 = vpop.eup %233 }
 0x215   :  { %v165_v48 = vmul.f32 0.6931472, %v234_v47 }
 0x217   :  { %v167_v50 = vadd.f32 %v165_v48, %v159_v49 }
 0x219   :  { %169 = vst.msk [vmem:[%s380_s4 + $0x8] sm:$0xff] %vm101_vm1, %v167_v50 }
 0x21a   :  { %311 = dma.done.wait [#allocation6], 256  }
 0x21b   :  { %312 = vsyncadd [#allocation6], 4294967040 }
 0x21c   :  { %191 = vsyncpa [#allocation5], 1 }
 0x21d   :  { %192 = vsyncpa [#allocation8], 1 }
 0x21e   :  { %193 = vsyncpa [#allocation6], 1 }

</bundles_post_ra>
